<compile_context>
chip_gen: v6e
topology: v6e:2x2x1
jax: 0.10.0
libtpu: 0.0.40
codegen_flags: <defaults>
</compile_context>

<pallas_src>
import math

import jax
import jax.numpy as jnp
from jax.experimental import pallas as pl
from jax.experimental.pallas import tpu as pltpu


def _mix_kernel(w_ref, f1_ref, f2_ref, o_ref):
    # Scalar path: one SMEM read + one sigmoid per grid step (EUP/scalar work,
    # free against the HBM-bound vector path).
    mf = jax.nn.sigmoid(w_ref[0])
    f1 = f1_ref[...].astype(jnp.float32)
    f2 = f2_ref[...].astype(jnp.float32)
    # out = f2 + mf*(f1 - f2)  ==  f1*mf + f2*(1 - mf); one scalar broadcast.
    o_ref[...] = (f2 + (f1 - f2) * mf).astype(o_ref.dtype)


def _plan_slab(total, itemsize):
    """Pick the padded 2D slab shape and tile sizes for a flattened array.

    Returns (rows_padded, cols, row_tile, lane_tile); rows_padded % row_tile
    == 0 and cols % lane_tile == 0, lane_tile a multiple of 128.
    """
    # Lane tile: lane-dense (multiple of 128), grown up to 1024 while the
    # input is large enough to fill it.
    lane_tile = 128
    while lane_tile < 1024 and total >= 2 * lane_tile * 8:
        lane_tile *= 2

    # Slab width: 2 lane tiles for big inputs so the lane grid axis has >= 2
    # parallel steps (helps v7x's 2 TensorCores); 1 otherwise.
    n_lane_tiles = 2 if total >= 2 * lane_tile * 64 else 1
    cols = lane_tile * n_lane_tiles

    rows = pl.cdiv(total, cols)
    min_rows = max(8, 32 // itemsize)       # 8 for f32, 16 for bf16, 32 for i8
    row_tile = min_rows
    while row_tile < 512 and rows >= 2 * row_tile:
        row_tile *= 2
    rows_padded = pl.cdiv(rows, row_tile) * row_tile
    # Shrink the row tile if zero-padding would waste more than ~1/8 of the
    # HBM traffic.
    while row_tile > min_rows and (rows_padded - rows) * 8 > rows_padded:
        row_tile //= 2
        rows_padded = pl.cdiv(rows, row_tile) * row_tile
    return rows_padded, cols, row_tile, lane_tile


def mix_forward(fea1, fea2, w):
    """Pallas implementation of Mix.forward.

    fea1, fea2: (N, C, H, W) arrays (NCHW, same as PyTorch), same shape/dtype.
    w:          (1,) float parameter (learnable scalar, init -0.8).
    """
    assert fea1.shape == fea2.shape
    assert fea1.dtype == fea2.dtype
    orig_shape = fea1.shape
    dtype = fea1.dtype
    total = math.prod(orig_shape)

    rows, cols, row_tile, lane_tile = _plan_slab(total, jnp.dtype(dtype).itemsize)
    padded_total = rows * cols

    f1 = fea1.reshape(-1)
    f2 = fea2.reshape(-1)
    if padded_total != total:
        pad = padded_total - total
        f1 = jnp.pad(f1, (0, pad))
        f2 = jnp.pad(f2, (0, pad))
    f1 = f1.reshape(rows, cols)
    f2 = f2.reshape(rows, cols)

    grid = (rows // row_tile, cols // lane_tile)

    out = pl.pallas_call(
        _mix_kernel,
        out_shape=jax.ShapeDtypeStruct((rows, cols), dtype),
        grid=grid,
        in_specs=[
            pl.BlockSpec(memory_space=pltpu.SMEM),                 # scalar w
            pl.BlockSpec((row_tile, lane_tile), lambda i, j: (i, j)),   # fea1
            pl.BlockSpec((row_tile, lane_tile), lambda i, j: (i, j)),   # fea2
        ],
        out_specs=pl.BlockSpec((row_tile, lane_tile), lambda i, j: (i, j)),
        compiler_params=pltpu.CompilerParams(
            dimension_semantics=("parallel", "parallel"),
            vmem_limit_bytes=32 * 1024 * 1024,
        ),
    )(w.astype(jnp.float32), f1, f2)

    out = out.reshape(-1)
    if padded_total != total:
        out = out[:total]
    return out.reshape(orig_shape)


if __name__ == "__main__":
    key = jax.random.PRNGKey(0)
    k1, k2, k3, k4 = jax.random.split(key, 4)

    # Deterministic parameter init, matching nn.Parameter(FloatTensor([m])), m=-0.8.
    w = jnp.array([-0.8], dtype=jnp.float32)
    mf = jax.nn.sigmoid(w[0])

    # Small shape consistent with the module's elementwise forward.
    fea1 = jax.random.normal(k1, (2, 4, 16, 16), dtype=jnp.float32)
    fea2 = jax.random.normal(k2, (2, 4, 16, 16), dtype=jnp.float32)
    out = jax.block_until_ready(mix_forward(fea1, fea2, w))
    ref = fea1 * mf + fea2 * (1.0 - mf)
    assert out.shape == fea1.shape
    assert jnp.allclose(out, ref, atol=1e-6, rtol=1e-6)

    # Non-128-divisible spatial dims: exercises the pad-and-slice path.
    g1 = jax.random.normal(k3, (2, 3, 15, 17), dtype=jnp.float32)
    g2 = jax.random.normal(k4, (2, 3, 15, 17), dtype=jnp.float32)
    out2 = jax.block_until_ready(mix_forward(g1, g2, w))
    ref2 = g1 * mf + g2 * (1.0 - mf)
    assert out2.shape == g1.shape
    assert jnp.allclose(out2, ref2, atol=1e-6, rtol=1e-6)

    print("KERNEL_OK")
</pallas_src>

<mosaic_0001>
module attributes {stable_mosaic.version = 11 : i64} {
  func.func @_mix_kernel(%arg0: i32, %arg1: i32, %arg2: memref<1xf32, #tpu.memory_space<smem>>, %arg3: memref<8x256xf32, #tpu.memory_space<vmem>>, %arg4: memref<8x256xf32, #tpu.memory_space<vmem>>, %arg5: memref<8x256xf32, #tpu.memory_space<vmem>>) attributes {dimension_semantics = [#tpu.dimension_semantics<parallel>, #tpu.dimension_semantics<parallel>], iteration_bounds = array<i64: 1, 1>, scalar_prefetch = 0 : i64, scratch_operands = 0 : i64, tpu.core_type = #tpu.core_type<tc>, window_params = [{transform_indices = @transform_0, window_bounds = array<i64: 1>}, {transform_indices = @transform_1, window_bounds = array<i64: 8, 256>}, {transform_indices = @transform_2, window_bounds = array<i64: 8, 256>}, {transform_indices = @transform_3, window_bounds = array<i64: 8, 256>}]} {
    %c0 = arith.constant 0 : index
    %0 = memref.load %arg2[%c0] : memref<1xf32, #tpu.memory_space<smem>>
    %1 = arith.negf %0 : f32
    %2 = math.exp %1 : f32
    %cst = arith.constant 1.000000e+00 : f32
    %3 = arith.addf %cst, %2 : f32
    %4 = arith.divf %cst, %3 : f32
    %c0_0 = arith.constant 0 : index
    %c0_1 = arith.constant 0 : index
    %5 = vector.load %arg3[%c0_0, %c0_1] : memref<8x256xf32, #tpu.memory_space<vmem>>, vector<8x256xf32>
    %c0_2 = arith.constant 0 : index
    %c0_3 = arith.constant 0 : index
    %6 = vector.load %arg4[%c0_2, %c0_3] : memref<8x256xf32, #tpu.memory_space<vmem>>, vector<8x256xf32>
    %7 = arith.subf %5, %6 : vector<8x256xf32>
    %8 = vector.broadcast %4 : f32 to vector<8x256xf32>
    %9 = arith.mulf %7, %8 : vector<8x256xf32>
    %10 = arith.addf %6, %9 : vector<8x256xf32>
    %c0_4 = arith.constant 0 : index
    %c0_5 = arith.constant 0 : index
    %11 = vector.load %arg5[%c0_4, %c0_5] : memref<8x256xf32, #tpu.memory_space<vmem>>, vector<8x256xf32>
    tpu.vector_store %arg5[%c0_4, %c0_5], %10 {strides = array<i32>} : memref<8x256xf32, #tpu.memory_space<vmem>>, vector<8x256xf32>,
    return
  }
  func.func @transform_0(%arg0: i32, %arg1: i32) -> i32 {
    %c0_i32 = arith.constant 0 : i32
    %c0_i32_0 = arith.constant 0 : i32
    return %c0_i32 : i32
  }
  func.func @transform_1(%arg0: i32, %arg1: i32) -> (i32, i32) {
    %c0_i32 = arith.constant 0 : i32
    return %arg0, %arg1 : i32, i32
  }
  func.func @transform_2(%arg0: i32, %arg1: i32) -> (i32, i32) {
    %c0_i32 = arith.constant 0 : i32
    return %arg0, %arg1 : i32, i32
  }
  func.func @transform_3(%arg0: i32, %arg1: i32) -> (i32, i32) {
    %c0_i32 = arith.constant 0 : i32
    return %arg0, %arg1 : i32, i32
  }
}

</mosaic_0001>

<bundles_post_ra>
// kernel: tpu_custom_call.1
= control target key start
LH: loop header
LB: loop body
LE: loop exit
PB: predicated region body
PF: predicated region fallthrough
CT: control target
= control target key end

     0   :  { %9 = vsyncpa [#allocation4], 0  ;;  %s191_s0 = inlined_call_operand.<no memory space> [shape: f32[1], index: 0, kind: input, shape index: {}]   ;;  %s192_s1 = inlined_call_operand.hbm [shape: f32[8,256], index: 1, kind: input, shape index: {}]   ;;  %s193_s2 = inlined_call_operand.hbm [shape: f32[8,256], index: 2, kind: input, shape index: {}]   ;;  %s194_s3 = inlined_call_operand.hbm [shape: f32[8,256], index: 3, kind: output, shape index: {}]  }
   0x1   :  { %10 = vsyncpa [#allocation7], 0 }
   0x2   :  { %11 = vsyncpa [#allocation5], 0  ;;  %s156_s12 = smov [#allocation3]   ;;  %s157_s14 = smov [#allocation6]  }
   0x3   :  { %s20_s13 = sshll.u32 %s156_s12, 4  ;;  %s30_s15 = sshll.u32 %s157_s14, 4  ;;  %s21_s13 = int_to_ptr.vmem [resolvable:$true] %s20_s13  ;;  %s31_s15 = int_to_ptr.vmem [resolvable:$true] %s30_s15 }
   0x4   :  { %s98_s16 = scalar_lea.vmem %s21_s13, 256  ;;  %p103_p1 = scmp.lt.s32.totalorder %s21_s13, %s21_s13 }
   0x5   :  { %p99_p0 = scmp.ne.s32.totalorder %s21_s13, %s98_s16  ;;  %p104_p2 = scmp.lt.s32.totalorder %s98_s16, %s98_s16 }
   0x7   :  { %p105_p3 = por %p104_p2, %p103_p1 }
   0x9   :  { %p106_p4 = pnand %p105_p3, %p99_p0 }
   0xb   :  { %109 = shalt.err (!%p106_p4)
}
   0xc   :  { %23 = dma.hbm_to_vmem [thread:$0]  %s192_s1, 256, %s21_s13, [#allocation4]  }
   0xd   :  { %s118_s19 = scalar_lea.vmem %s31_s15, 256  ;;  %p123_p6 = scmp.lt.s32.totalorder %s31_s15, %s31_s15 }
   0xe   :  { %p119_p5 = scmp.ne.s32.totalorder %s31_s15, %s118_s19  ;;  %p124_p7 = scmp.lt.s32.totalorder %s118_s19, %s118_s19 }
  0x10   :  { %p125_p8 = por %p124_p7, %p123_p6 }
  0x12   :  { %p126_p9 = pnand %p125_p8, %p119_p5 }
  0x14   :  { %129 = shalt.err (!%p126_p9)
}
  0x15   :  { %33 = dma.hbm_to_vmem [thread:$0]  %s193_s2, 256, %s31_s15, [#allocation7]  }
  0x16   :  { %150 = dma.done.wait [#allocation4], 256  }
  0x17   :  { %151 = vsyncadd [#allocation4], 4294967040  ;;  %s41_s24 = sxor.u32 2147483648, %s191_s0 }
  0x18   :  { %152 = dma.done.wait [#allocation7], 256  }
  0x19   :  { %153 = vsyncadd [#allocation7], 4294967040  ;;  %v42_v0 = vstv %s41_s24  ;;  %v50_v5 = vld [vmem:[#allocation3] sm:$0xff]  ;;  %v51_v6 = vld [vmem:[#allocation3 + $0x8] sm:$0xff]  ;;  %s158_s2 = smov [#allocation8]  }
  0x1a   :  { %v43_v1 = vmul.f32 1.442695, %v42_v0  ;;  %v52_v7 = vld [vmem:[#allocation6] sm:$0xff]  ;;  %v53_v8 = vld [vmem:[#allocation6 + $0x8] sm:$0xff]  ;;  %s69_s26 = sshll.u32 %s158_s2, 4  ;;  %s70_s26 = int_to_ptr.vmem [resolvable:$true] %s69_s26 }
  0x1b   :  { %v54_v9 = vsub.f32 %v50_v5, %v52_v7  ;;  %v55_v10 = vsub.f32 %v51_v6, %v53_v8  ;;  %s130_s27 = scalar_lea.vmem %s70_s26, 256  ;;  %p135_p11 = scmp.lt.s32.totalorder %s70_s26, %s70_s26 }
  0x1c   :  { %86 = vpow2.f32 %v43_v1  ;;  %p131_p10 = scmp.ne.s32.totalorder %s70_s26, %s130_s27  ;;  %p136_p12 = scmp.lt.s32.totalorder %s130_s27, %s130_s27 }
  0x1e   :  { %p137_p13 = por %p136_p12, %p135_p11 }
  0x20   :  { %p138_p0 = pnand %p137_p13, %p131_p10 }
  0x29   :  { %v87_v2 = vpop.eup %86 }
  0x2a   :  { %79 = vpush %v87_v2 }
  0x5b   :  { %s80_s1 = spop %79 }
  0x5c   :  { %s46_s25 = sadd.f32 1.0, %s80_s1 }
  0x5e   :  { %v47_v3 = vstv %s46_s25 }
  0x5f   :  { %88 = vrcp.f32 %v47_v3 }
  0x6c   :  { %v89_v4 = vpop.eup %88 }
  0x6d   :  { %81 = vpush %v89_v4 }
  0x9e   :  { %s82_s0 = spop %81 }
  0x9f   :  { %v56_v11 = vstv %s82_s0 }
  0xa0   :  { %v57_v12 = vmul.f32 %v56_v11, %v54_v9  ;;  %v58_v13 = vmul.f32 %v56_v11, %v55_v10 }
  0xa2   :  { %v59_v14 = vadd.f32 %v57_v12, %v52_v7  ;;  %v60_v15 = vadd.f32 %v58_v13, %v53_v8 }
  0xa4   :  { %61 = vst [vmem:[#allocation8] sm:$0xff] %v59_v14  ;;  %62 = vst [vmem:[#allocation8 + $0x8] sm:$0xff] %v60_v15 }
  0xa5   :  { %141 = shalt.err (!%p138_p0)
}
  0xa6   :  { %72 = dma.vmem_to_hbm [thread:$0]  %s70_s26, 256, %s194_s3, [#allocation5]  }
  0xa7   :  { %154 = dma.done.wait [#allocation5], 256  }
  0xa8   :  { %155 = vsyncadd [#allocation5], 4294967040 }
  0xa9   :  { %76 = vsyncpa [#allocation4], 1 }
  0xaa   :  { %77 = vsyncpa [#allocation7], 1 }
  0xab   :  { %78 = vsyncpa [#allocation5], 1 }

</bundles_post_ra>
